<compile_context>
chip_gen: v7x
topology: tpu7x:2x2x1
jax: 0.10.0
libtpu: 0.0.40
codegen_flags: <defaults>
</compile_context>

<pallas_src>
import functools

import jax
import jax.numpy as jnp
from jax.experimental import pallas as pl
from jax.experimental.pallas import tpu as pltpu

N_HOPS = 2
NUM_MPS = 2
LANE = 128


def _round_up(n, m=LANE):
    return ((n + m - 1) // m) * m


def _pad2d(a, rows, cols):
    return jnp.pad(a, ((0, rows - a.shape[0]), (0, cols - a.shape[1])))


def _pad_last(a, cols):
    pad = [(0, 0)] * (a.ndim - 1) + [(0, cols - a.shape[-1])]
    return jnp.pad(a, pad)


def _full_spec(shape):
    nd = len(shape)
    return pl.BlockSpec(shape, lambda *args: (0,) * nd)


# ----------------------------------------------------------------------------
# Fused kernel: per-metapath InitialLayer + N_HOPS propagate/transform +
# HAN-style semantic attention + AGLLinear decoder.
# ----------------------------------------------------------------------------
def _hegnn_fused_kernel(feats_ref, w_init_ref, b_init_ref, adj_ref,
                        w_hops_ref, b_hops_ref,
                        att_w_ref, att_b_ref, att_q_ref,
                        dec_w_ref, dec_b_ref, o_ref,
                        *, num_mps, n_hops, n_nodes):
    att_w = att_w_ref[...]                 # (H_PAD, A_PAD) bf16
    att_b = att_b_ref[...]                 # (1, A_PAD)    f32
    q_row = att_q_ref[...]                 # (1, A_PAD)    f32
    inv_n = 1.0 / float(n_nodes)

    hs = []
    scores = []
    for p in range(num_mps):               # static unroll (NUM_MPS == 2)
        # InitialLayer collapsed into a single bf16 matmul, f32 accumulation.
        x = jnp.dot(feats_ref[p], w_init_ref[p],
                    preferred_element_type=jnp.float32) + b_init_ref[p]

        adj = adj_ref[p]                   # (N, N) bf16, VMEM-resident all hops
        h = x
        for hop in range(n_hops):          # static unroll (N_HOPS == 2)
            agg = jnp.dot(adj, h.astype(jnp.bfloat16),
                          preferred_element_type=jnp.float32)
            y = jnp.dot(agg.astype(jnp.bfloat16), w_hops_ref[p, hop],
                        preferred_element_type=jnp.float32) + b_hops_ref[p, hop]
            h = jnp.maximum(y, 0.0)
        hs.append(h)

        # Semantic-attention score while h_p is still VMEM-resident.
        proj = jnp.tanh(jnp.dot(h.astype(jnp.bfloat16), att_w,
                                preferred_element_type=jnp.float32) + att_b)
        # 1-column score kept off the MXU: VPU multiply + full reduction.
        s = jnp.sum(proj * q_row, axis=(0, 1), keepdims=True) * inv_n   # (1,1)
        scores.append(s)

    # Softmax over the P metapath scores (P is tiny and static).
    m = scores[0]
    for p in range(1, num_mps):
        m = jnp.maximum(m, scores[p])
    exps = [jnp.exp(s - m) for s in scores]
    denom = exps[0]
    for p in range(1, num_mps):
        denom = denom + exps[p]
    inv = 1.0 / denom

    emb = (exps[0] * inv) * hs[0]
    for p in range(1, num_mps):
        emb = emb + (exps[p] * inv) * hs[p]

    # AGLLinear decoder: bf16 operands, f32 accumulation, lane-dense store.
    out = jnp.dot(emb.astype(jnp.bfloat16), dec_w_ref[...],
                  preferred_element_type=jnp.float32) + dec_b_ref[...]
    o_ref[...] = out.astype(o_ref.dtype)


def hegnn_fused_pallas(feats_cat, w_init, b_init, adj_stack, w_hops, b_hops,
                       att_w, att_b, att_q, dec_w, dec_b):
    P, N, F_PAD = feats_cat.shape
    H_PAD = w_init.shape[-1]
    A_PAD = att_w.shape[-1]
    O_PAD = dec_w.shape[-1]

    inputs = (feats_cat, w_init, b_init, adj_stack, w_hops, b_hops,
              att_w, att_b, att_q, dec_w, dec_b)
    in_specs = [_full_spec(x.shape) for x in inputs]

    # Advisory cost estimate so XLA schedules the (tiny) host-side packing
    # around this very short kernel.
    flops = int(
        P * 2 * N * F_PAD * H_PAD
        + P * N_HOPS * (2 * N * N * H_PAD + 2 * N * H_PAD * H_PAD)
        + P * 2 * N * H_PAD * A_PAD
        + 2 * N * H_PAD * O_PAD)
    transcendentals = int(P * (N * A_PAD + 1))
    bytes_accessed = int(sum(int(x.size) * x.dtype.itemsize for x in inputs)
                         + N * O_PAD * 4)

    # Explicit scoped-VMEM budget sized from the actual (whole-array) blocks,
    # with double-buffer headroom; capped for v7x's 64 MiB physical VMEM.
    vmem_bytes = min(64 << 20, max(4 << 20, 2 * bytes_accessed + (1 << 20)))

    kernel = functools.partial(_hegnn_fused_kernel, num_mps=P,
                               n_hops=N_HOPS, n_nodes=N)
    return pl.pallas_call(
        kernel,
        out_shape=jax.ShapeDtypeStruct((N, O_PAD), jnp.float32),
        in_specs=in_specs,
        out_specs=_full_spec((N, O_PAD)),
        compiler_params=pltpu.CompilerParams(vmem_limit_bytes=vmem_bytes),
        cost_estimate=pl.CostEstimate(flops=flops,
                                      transcendentals=transcendentals,
                                      bytes_accessed=bytes_accessed),
    )(*inputs)


# ----------------------------------------------------------------------------
# Parameter init (torch.nn.Linear-style uniform(+-1/sqrt(fan_in)))
# ----------------------------------------------------------------------------
def _init_linear(key, fan_in, fan_out):
    kw, kb = jax.random.split(key)
    bound = 1.0 / float(fan_in) ** 0.5
    w = jax.random.uniform(kw, (fan_in, fan_out), jnp.float32, -bound, bound)
    b = jax.random.uniform(kb, (fan_out,), jnp.float32, -bound, bound)
    return w, b


def init_hegnn_params(key, feats_dims, hidden_dim, out_dim, att_dim):
    keys = iter(jax.random.split(key, 64))
    params = {"initial": [], "hops": []}
    for _ in range(NUM_MPS):
        per_feat = {k: _init_linear(next(keys), d, hidden_dim)
                    for k, d in feats_dims.items()}
        params["initial"].append(per_feat)
    for _ in range(NUM_MPS):
        hops = [_init_linear(next(keys), hidden_dim, hidden_dim)
                for _ in range(N_HOPS)]
        params["hops"].append(hops)
    params["att_w"], params["att_b"] = _init_linear(next(keys), hidden_dim, att_dim)
    params["att_q"] = jax.random.uniform(
        next(keys), (att_dim,), jnp.float32, -1.0, 1.0)
    params["dec_w"], params["dec_b"] = _init_linear(next(keys), hidden_dim, out_dim)
    return params


# ----------------------------------------------------------------------------
# Forward: host-side packing (zero-pad to lane-dense 128, bf16 pre-cast, once)
# + one fused Pallas kernel, then slice the padded output.
# ----------------------------------------------------------------------------
def hegnn_forward(params, n_feats_per_mp, adjs):
    feat_keys = sorted(n_feats_per_mp[0].keys())
    F = sum(n_feats_per_mp[0][k].shape[1] for k in feat_keys)
    H = params["dec_w"].shape[0]
    A = params["att_w"].shape[1]
    O = params["dec_w"].shape[1]
    F_PAD, H_PAD, A_PAD, O_PAD = (_round_up(d) for d in (F, H, A, O))

    # Features: concat per-key, zero-pad lanes, stack metapaths, bf16.
    feats_cat = jnp.stack([
        _pad_last(jnp.concatenate([n_feats_per_mp[i][k] for k in feat_keys],
                                  axis=1), F_PAD)
        for i in range(NUM_MPS)], axis=0).astype(jnp.bfloat16)   # (P, N, F_PAD)

    # InitialLayer collapse: sum_k x_k @ W_k == [x_0|x_1] @ [W_0; W_1].
    w_init = jnp.stack([
        _pad2d(jnp.concatenate([params["initial"][i][k][0] for k in feat_keys],
                               axis=0), F_PAD, H_PAD)
        for i in range(NUM_MPS)], axis=0).astype(jnp.bfloat16)   # (P, F_PAD, H_PAD)
    b_init = jnp.stack([
        _pad_last(sum(params["initial"][i][k][1] for k in feat_keys)[None, :],
                  H_PAD)
        for i in range(NUM_MPS)], axis=0)                        # (P, 1, H_PAD)

    adj_stack = jnp.stack(adjs, axis=0).astype(jnp.bfloat16)     # (P, N, N)

    w_hops = jnp.stack([
        jnp.stack([_pad2d(params["hops"][i][h][0], H_PAD, H_PAD)
                   for h in range(N_HOPS)], axis=0)
        for i in range(NUM_MPS)], axis=0).astype(jnp.bfloat16)   # (P, NH, H_PAD, H_PAD)
    b_hops = jnp.stack([
        jnp.stack([_pad_last(params["hops"][i][h][1][None, :], H_PAD)
                   for h in range(N_HOPS)], axis=0)
        for i in range(NUM_MPS)], axis=0)                        # (P, NH, 1, H_PAD)

    att_w = _pad2d(params["att_w"], H_PAD, A_PAD).astype(jnp.bfloat16)
    att_b = _pad_last(params["att_b"][None, :], A_PAD)           # (1, A_PAD) f32
    att_q = _pad_last(params["att_q"][None, :], A_PAD)           # (1, A_PAD) f32
    dec_w = _pad2d(params["dec_w"], H_PAD, O_PAD).astype(jnp.bfloat16)
    dec_b = _pad_last(params["dec_b"][None, :], O_PAD)           # (1, O_PAD) f32

    out_pad = hegnn_fused_pallas(feats_cat, w_init, b_init, adj_stack,
                                 w_hops, b_hops, att_w, att_b, att_q,
                                 dec_w, dec_b)
    return out_pad[:, :O]


# ----------------------------------------------------------------------------
def _make_adj(key, n_nodes):
    a = (jax.random.uniform(key, (n_nodes, n_nodes)) < 0.2).astype(jnp.float32)
    a = a + jnp.eye(n_nodes, dtype=jnp.float32)
    return a / jnp.sum(a, axis=1, keepdims=True)


if __name__ == "__main__":
    N_NODES = 32
    HIDDEN = 32
    OUT_DIM = 8
    ATT_DIM = 16
    feats_dims = {"dense_feat": 64, "id_feat": 16}

    root = jax.random.PRNGKey(0)
    k_param, k_data = jax.random.split(root)
    params = init_hegnn_params(k_param, feats_dims, HIDDEN, OUT_DIM, ATT_DIM)

    data_keys = iter(jax.random.split(k_data, 16))
    n_feats_per_mp = []
    adjs = []
    for _ in range(NUM_MPS):
        feats = {k: jax.random.normal(next(data_keys), (N_NODES, d), jnp.float32)
                 for k, d in feats_dims.items()}
        n_feats_per_mp.append(feats)
        adjs.append(_make_adj(next(data_keys), N_NODES))

    out = hegnn_forward(params, n_feats_per_mp, adjs)
    out = jax.block_until_ready(out)
    assert out.shape == (N_NODES, OUT_DIM)
    assert bool(jnp.all(jnp.isfinite(out)))
    print("KERNEL_OK")
</pallas_src>

<mosaic_0001>
module attributes {stable_mosaic.version = 11 : i64} {
  func.func @_hegnn_fused_kernel(%arg0: memref<2x32x128xbf16, #tpu.memory_space<vmem>>, %arg1: memref<2x128x128xbf16, #tpu.memory_space<vmem>>, %arg2: memref<2x1x128xf32, #tpu.memory_space<vmem>>, %arg3: memref<2x32x32xbf16, #tpu.memory_space<vmem>>, %arg4: memref<2x2x128x128xbf16, #tpu.memory_space<vmem>>, %arg5: memref<2x2x1x128xf32, #tpu.memory_space<vmem>>, %arg6: memref<128x128xbf16, #tpu.memory_space<vmem>>, %arg7: memref<1x128xf32, #tpu.memory_space<vmem>>, %arg8: memref<1x128xf32, #tpu.memory_space<vmem>>, %arg9: memref<128x128xbf16, #tpu.memory_space<vmem>>, %arg10: memref<1x128xf32, #tpu.memory_space<vmem>>, %arg11: memref<32x128xf32, #tpu.memory_space<vmem>>) attributes {dimension_semantics = [], scalar_prefetch = 0 : i64, scratch_operands = 0 : i64, tpu.core_type = #tpu.core_type<tc>} {
    %c0 = arith.constant 0 : index
    %c0_0 = arith.constant 0 : index
    %0 = vector.load %arg6[%c0, %c0_0] : memref<128x128xbf16, #tpu.memory_space<vmem>>, vector<128x128xbf16>
    %c0_1 = arith.constant 0 : index
    %c0_2 = arith.constant 0 : index
    %1 = vector.load %arg7[%c0_1, %c0_2] : memref<1x128xf32, #tpu.memory_space<vmem>>, vector<1x128xf32>
    %c0_3 = arith.constant 0 : index
    %c0_4 = arith.constant 0 : index
    %2 = vector.load %arg8[%c0_3, %c0_4] : memref<1x128xf32, #tpu.memory_space<vmem>>, vector<1x128xf32>
    %c0_5 = arith.constant 0 : index
    %c0_6 = arith.constant 0 : index
    %c0_7 = arith.constant 0 : index
    %3 = vector.load %arg0[%c0_5, %c0_6, %c0_7] : memref<2x32x128xbf16, #tpu.memory_space<vmem>>, vector<1x32x128xbf16>
    %4 = vector.shape_cast %3 : vector<1x32x128xbf16> to vector<32x128xbf16>
    %c0_8 = arith.constant 0 : index
    %c0_9 = arith.constant 0 : index
    %c0_10 = arith.constant 0 : index
    %5 = vector.load %arg1[%c0_8, %c0_9, %c0_10] : memref<2x128x128xbf16, #tpu.memory_space<vmem>>, vector<1x128x128xbf16>
    %6 = vector.shape_cast %5 : vector<1x128x128xbf16> to vector<128x128xbf16>
    %cst = arith.constant dense<0.000000e+00> : vector<32x128xf32>
    %7 = tpu.matmul %4, %6, %cst {dimension_numbers = #tpu.dot_dimension_numbers<[1], [0], [0], [1], [0, 0, 1, 1], [], []>} : vector<32x128xbf16>, vector<128x128xbf16>, vector<32x128xf32> -> vector<32x128xf32>
    %c0_11 = arith.constant 0 : index
    %c0_12 = arith.constant 0 : index
    %c0_13 = arith.constant 0 : index
    %8 = vector.load %arg2[%c0_11, %c0_12, %c0_13] : memref<2x1x128xf32, #tpu.memory_space<vmem>>, vector<1x1x128xf32>
    %9 = vector.shape_cast %8 : vector<1x1x128xf32> to vector<1x128xf32>
    %10 = vector.broadcast %9 : vector<1x128xf32> to vector<32x128xf32>
    %11 = arith.addf %7, %10 : vector<32x128xf32>
    %c0_14 = arith.constant 0 : index
    %c0_15 = arith.constant 0 : index
    %c0_16 = arith.constant 0 : index
    %12 = vector.load %arg3[%c0_14, %c0_15, %c0_16] : memref<2x32x32xbf16, #tpu.memory_space<vmem>>, vector<1x32x32xbf16>
    %13 = vector.shape_cast %12 : vector<1x32x32xbf16> to vector<32x32xbf16>
    %14 = arith.truncf %11 : vector<32x128xf32> to vector<32x128xbf16>
    %cst_17 = arith.constant dense<0.000000e+00> : vector<32x128xf32>
    %15 = tpu.matmul %13, %14, %cst_17 {dimension_numbers = #tpu.dot_dimension_numbers<[1], [0], [0], [1], [0, 0, 1, 1], [], []>} : vector<32x32xbf16>, vector<32x128xbf16>, vector<32x128xf32> -> vector<32x128xf32>
    %16 = arith.truncf %15 : vector<32x128xf32> to vector<32x128xbf16>
    %c0_18 = arith.constant 0 : index
    %c0_19 = arith.constant 0 : index
    %c0_20 = arith.constant 0 : index
    %c0_21 = arith.constant 0 : index
    %17 = vector.load %arg4[%c0_18, %c0_19, %c0_20, %c0_21] : memref<2x2x128x128xbf16, #tpu.memory_space<vmem>>, vector<1x1x128x128xbf16>
    %18 = vector.shape_cast %17 : vector<1x1x128x128xbf16> to vector<128x128xbf16>
    %cst_22 = arith.constant dense<0.000000e+00> : vector<32x128xf32>
    %19 = tpu.matmul %16, %18, %cst_22 {dimension_numbers = #tpu.dot_dimension_numbers<[1], [0], [0], [1], [0, 0, 1, 1], [], []>} : vector<32x128xbf16>, vector<128x128xbf16>, vector<32x128xf32> -> vector<32x128xf32>
    %c0_23 = arith.constant 0 : index
    %c0_24 = arith.constant 0 : index
    %c0_25 = arith.constant 0 : index
    %c0_26 = arith.constant 0 : index
    %20 = vector.load %arg5[%c0_23, %c0_24, %c0_25, %c0_26] : memref<2x2x1x128xf32, #tpu.memory_space<vmem>>, vector<1x1x1x128xf32>
    %21 = vector.shape_cast %20 : vector<1x1x1x128xf32> to vector<1x128xf32>
    %22 = vector.broadcast %21 : vector<1x128xf32> to vector<32x128xf32>
    %23 = arith.addf %19, %22 : vector<32x128xf32>
    %cst_27 = arith.constant 0.000000e+00 : f32
    %24 = vector.broadcast %cst_27 : f32 to vector<32x128xf32>
    %25 = arith.maximumf %23, %24 : vector<32x128xf32>
    %26 = arith.truncf %25 : vector<32x128xf32> to vector<32x128xbf16>
    %cst_28 = arith.constant dense<0.000000e+00> : vector<32x128xf32>
    %27 = tpu.matmul %13, %26, %cst_28 {dimension_numbers = #tpu.dot_dimension_numbers<[1], [0], [0], [1], [0, 0, 1, 1], [], []>} : vector<32x32xbf16>, vector<32x128xbf16>, vector<32x128xf32> -> vector<32x128xf32>
    %28 = arith.truncf %27 : vector<32x128xf32> to vector<32x128xbf16>
    %c0_29 = arith.constant 0 : index
    %c1 = arith.constant 1 : index
    %c0_30 = arith.constant 0 : index
    %c0_31 = arith.constant 0 : index
    %29 = vector.load %arg4[%c0_29, %c1, %c0_30, %c0_31] : memref<2x2x128x128xbf16, #tpu.memory_space<vmem>>, vector<1x1x128x128xbf16>
    %30 = vector.shape_cast %29 : vector<1x1x128x128xbf16> to vector<128x128xbf16>
    %cst_32 = arith.constant dense<0.000000e+00> : vector<32x128xf32>
    %31 = tpu.matmul %28, %30, %cst_32 {dimension_numbers = #tpu.dot_dimension_numbers<[1], [0], [0], [1], [0, 0, 1, 1], [], []>} : vector<32x128xbf16>, vector<128x128xbf16>, vector<32x128xf32> -> vector<32x128xf32>
    %c0_33 = arith.constant 0 : index
    %c1_34 = arith.constant 1 : index
    %c0_35 = arith.constant 0 : index
    %c0_36 = arith.constant 0 : index
    %32 = vector.load %arg5[%c0_33, %c1_34, %c0_35, %c0_36] : memref<2x2x1x128xf32, #tpu.memory_space<vmem>>, vector<1x1x1x128xf32>
    %33 = vector.shape_cast %32 : vector<1x1x1x128xf32> to vector<1x128xf32>
    %34 = vector.broadcast %33 : vector<1x128xf32> to vector<32x128xf32>
    %35 = arith.addf %31, %34 : vector<32x128xf32>
    %cst_37 = arith.constant 0.000000e+00 : f32
    %36 = vector.broadcast %cst_37 : f32 to vector<32x128xf32>
    %37 = arith.maximumf %35, %36 : vector<32x128xf32>
    %38 = arith.truncf %37 : vector<32x128xf32> to vector<32x128xbf16>
    %cst_38 = arith.constant dense<0.000000e+00> : vector<32x128xf32>
    %39 = tpu.matmul %38, %0, %cst_38 {dimension_numbers = #tpu.dot_dimension_numbers<[1], [0], [0], [1], [0, 0, 1, 1], [], []>} : vector<32x128xbf16>, vector<128x128xbf16>, vector<32x128xf32> -> vector<32x128xf32>
    %40 = vector.broadcast %1 : vector<1x128xf32> to vector<32x128xf32>
    %41 = arith.addf %39, %40 : vector<32x128xf32>
    %42 = math.tanh %41 : vector<32x128xf32>
    %43 = vector.broadcast %2 : vector<1x128xf32> to vector<32x128xf32>
    %44 = arith.mulf %42, %43 : vector<32x128xf32>
    %45 = vector.shape_cast %44 : vector<32x128xf32> to vector<1x32x128xf32>
    %cst_39 = arith.constant dense<0.000000e+00> : vector<1xf32>
    %46 = vector.multi_reduction <add>, %45, %cst_39 [1, 2] : vector<1x32x128xf32> to vector<1xf32>
    %47 = vector.shape_cast %46 : vector<1xf32> to vector<1x1x1xf32>
    %48 = vector.extract %47[0, 0, 0] : f32 from vector<1x1x1xf32>
    %49 = vector.broadcast %48 : f32 to vector<1x1xf32>
    %cst_40 = arith.constant 3.125000e-02 : f32
    %50 = vector.broadcast %cst_40 : f32 to vector<1x1xf32>
    %51 = arith.mulf %49, %50 : vector<1x1xf32>
    %c1_41 = arith.constant 1 : index
    %c0_42 = arith.constant 0 : index
    %c0_43 = arith.constant 0 : index
    %52 = vector.load %arg0[%c1_41, %c0_42, %c0_43] : memref<2x32x128xbf16, #tpu.memory_space<vmem>>, vector<1x32x128xbf16>
    %53 = vector.shape_cast %52 : vector<1x32x128xbf16> to vector<32x128xbf16>
    %c1_44 = arith.constant 1 : index
    %c0_45 = arith.constant 0 : index
    %c0_46 = arith.constant 0 : index
    %54 = vector.load %arg1[%c1_44, %c0_45, %c0_46] : memref<2x128x128xbf16, #tpu.memory_space<vmem>>, vector<1x128x128xbf16>
    %55 = vector.shape_cast %54 : vector<1x128x128xbf16> to vector<128x128xbf16>
    %cst_47 = arith.constant dense<0.000000e+00> : vector<32x128xf32>
    %56 = tpu.matmul %53, %55, %cst_47 {dimension_numbers = #tpu.dot_dimension_numbers<[1], [0], [0], [1], [0, 0, 1, 1], [], []>} : vector<32x128xbf16>, vector<128x128xbf16>, vector<32x128xf32> -> vector<32x128xf32>
    %c1_48 = arith.constant 1 : index
    %c0_49 = arith.constant 0 : index
    %c0_50 = arith.constant 0 : index
    %57 = vector.load %arg2[%c1_48, %c0_49, %c0_50] : memref<2x1x128xf32, #tpu.memory_space<vmem>>, vector<1x1x128xf32>
    %58 = vector.shape_cast %57 : vector<1x1x128xf32> to vector<1x128xf32>
    %59 = vector.broadcast %58 : vector<1x128xf32> to vector<32x128xf32>
    %60 = arith.addf %56, %59 : vector<32x128xf32>
    %c1_51 = arith.constant 1 : index
    %c0_52 = arith.constant 0 : index
    %c0_53 = arith.constant 0 : index
    %61 = vector.load %arg3[%c1_51, %c0_52, %c0_53] : memref<2x32x32xbf16, #tpu.memory_space<vmem>>, vector<1x32x32xbf16>
    %62 = vector.shape_cast %61 : vector<1x32x32xbf16> to vector<32x32xbf16>
    %63 = arith.truncf %60 : vector<32x128xf32> to vector<32x128xbf16>
    %cst_54 = arith.constant dense<0.000000e+00> : vector<32x128xf32>
    %64 = tpu.matmul %62, %63, %cst_54 {dimension_numbers = #tpu.dot_dimension_numbers<[1], [0], [0], [1], [0, 0, 1, 1], [], []>} : vector<32x32xbf16>, vector<32x128xbf16>, vector<32x128xf32> -> vector<32x128xf32>
    %65 = arith.truncf %64 : vector<32x128xf32> to vector<32x128xbf16>
    %c1_55 = arith.constant 1 : index
    %c0_56 = arith.constant 0 : index
    %c0_57 = arith.constant 0 : index
    %c0_58 = arith.constant 0 : index
    %66 = vector.load %arg4[%c1_55, %c0_56, %c0_57, %c0_58] : memref<2x2x128x128xbf16, #tpu.memory_space<vmem>>, vector<1x1x128x128xbf16>
    %67 = vector.shape_cast %66 : vector<1x1x128x128xbf16> to vector<128x128xbf16>
    %cst_59 = arith.constant dense<0.000000e+00> : vector<32x128xf32>
    %68 = tpu.matmul %65, %67, %cst_59 {dimension_numbers = #tpu.dot_dimension_numbers<[1], [0], [0], [1], [0, 0, 1, 1], [], []>} : vector<32x128xbf16>, vector<128x128xbf16>, vector<32x128xf32> -> vector<32x128xf32>
    %c1_60 = arith.constant 1 : index
    %c0_61 = arith.constant 0 : index
    %c0_62 = arith.constant 0 : index
    %c0_63 = arith.constant 0 : index
    %69 = vector.load %arg5[%c1_60, %c0_61, %c0_62, %c0_63] : memref<2x2x1x128xf32, #tpu.memory_space<vmem>>, vector<1x1x1x128xf32>
    %70 = vector.shape_cast %69 : vector<1x1x1x128xf32> to vector<1x128xf32>
    %71 = vector.broadcast %70 : vector<1x128xf32> to vector<32x128xf32>
    %72 = arith.addf %68, %71 : vector<32x128xf32>
    %cst_64 = arith.constant 0.000000e+00 : f32
    %73 = vector.broadcast %cst_64 : f32 to vector<32x128xf32>
    %74 = arith.maximumf %72, %73 : vector<32x128xf32>
    %75 = arith.truncf %74 : vector<32x128xf32> to vector<32x128xbf16>
    %cst_65 = arith.constant dense<0.000000e+00> : vector<32x128xf32>
    %76 = tpu.matmul %62, %75, %cst_65 {dimension_numbers = #tpu.dot_dimension_numbers<[1], [0], [0], [1], [0, 0, 1, 1], [], []>} : vector<32x32xbf16>, vector<32x128xbf16>, vector<32x128xf32> -> vector<32x128xf32>
    %77 = arith.truncf %76 : vector<32x128xf32> to vector<32x128xbf16>
    %c1_66 = arith.constant 1 : index
    %c1_67 = arith.constant 1 : index
    %c0_68 = arith.constant 0 : index
    %c0_69 = arith.constant 0 : index
    %78 = vector.load %arg4[%c1_66, %c1_67, %c0_68, %c0_69] : memref<2x2x128x128xbf16, #tpu.memory_space<vmem>>, vector<1x1x128x128xbf16>
    %79 = vector.shape_cast %78 : vector<1x1x128x128xbf16> to vector<128x128xbf16>
    %cst_70 = arith.constant dense<0.000000e+00> : vector<32x128xf32>
    %80 = tpu.matmul %77, %79, %cst_70 {dimension_numbers = #tpu.dot_dimension_numbers<[1], [0], [0], [1], [0, 0, 1, 1], [], []>} : vector<32x128xbf16>, vector<128x128xbf16>, vector<32x128xf32> -> vector<32x128xf32>
    %c1_71 = arith.constant 1 : index
    %c1_72 = arith.constant 1 : index
    %c0_73 = arith.constant 0 : index
    %c0_74 = arith.constant 0 : index
    %81 = vector.load %arg5[%c1_71, %c1_72, %c0_73, %c0_74] : memref<2x2x1x128xf32, #tpu.memory_space<vmem>>, vector<1x1x1x128xf32>
    %82 = vector.shape_cast %81 : vector<1x1x1x128xf32> to vector<1x128xf32>
    %83 = vector.broadcast %82 : vector<1x128xf32> to vector<32x128xf32>
    %84 = arith.addf %80, %83 : vector<32x128xf32>
    %cst_75 = arith.constant 0.000000e+00 : f32
    %85 = vector.broadcast %cst_75 : f32 to vector<32x128xf32>
    %86 = arith.maximumf %84, %85 : vector<32x128xf32>
    %87 = arith.truncf %86 : vector<32x128xf32> to vector<32x128xbf16>
    %cst_76 = arith.constant dense<0.000000e+00> : vector<32x128xf32>
    %88 = tpu.matmul %87, %0, %cst_76 {dimension_numbers = #tpu.dot_dimension_numbers<[1], [0], [0], [1], [0, 0, 1, 1], [], []>} : vector<32x128xbf16>, vector<128x128xbf16>, vector<32x128xf32> -> vector<32x128xf32>
    %89 = vector.broadcast %1 : vector<1x128xf32> to vector<32x128xf32>
    %90 = arith.addf %88, %89 : vector<32x128xf32>
    %91 = math.tanh %90 : vector<32x128xf32>
    %92 = vector.broadcast %2 : vector<1x128xf32> to vector<32x128xf32>
    %93 = arith.mulf %91, %92 : vector<32x128xf32>
    %94 = vector.shape_cast %93 : vector<32x128xf32> to vector<1x32x128xf32>
    %cst_77 = arith.constant dense<0.000000e+00> : vector<1xf32>
    %95 = vector.multi_reduction <add>, %94, %cst_77 [1, 2] : vector<1x32x128xf32> to vector<1xf32>
    %96 = vector.shape_cast %95 : vector<1xf32> to vector<1x1x1xf32>
    %97 = vector.extract %96[0, 0, 0] : f32 from vector<1x1x1xf32>
    %98 = vector.broadcast %97 : f32 to vector<1x1xf32>
    %cst_78 = arith.constant 3.125000e-02 : f32
    %99 = vector.broadcast %cst_78 : f32 to vector<1x1xf32>
    %100 = arith.mulf %98, %99 : vector<1x1xf32>
    %101 = arith.maximumf %51, %100 : vector<1x1xf32>
    %102 = arith.subf %51, %101 : vector<1x1xf32>
    %103 = math.exp %102 : vector<1x1xf32>
    %104 = arith.subf %100, %101 : vector<1x1xf32>
    %105 = math.exp %104 : vector<1x1xf32>
    %106 = arith.addf %103, %105 : vector<1x1xf32>
    %cst_79 = arith.constant 1.000000e+00 : f32
    %107 = vector.broadcast %cst_79 : f32 to vector<1x1xf32>
    %108 = arith.divf %107, %106 : vector<1x1xf32>
    %109 = arith.mulf %103, %108 : vector<1x1xf32>
    %110 = vector.broadcast %109 : vector<1x1xf32> to vector<32x128xf32>
    %111 = arith.mulf %110, %37 : vector<32x128xf32>
    %112 = arith.mulf %105, %108 : vector<1x1xf32>
    %113 = vector.broadcast %112 : vector<1x1xf32> to vector<32x128xf32>
    %114 = arith.mulf %113, %86 : vector<32x128xf32>
    %115 = arith.addf %111, %114 : vector<32x128xf32>
    %116 = arith.truncf %115 : vector<32x128xf32> to vector<32x128xbf16>
    %c0_80 = arith.constant 0 : index
    %c0_81 = arith.constant 0 : index
    %117 = vector.load %arg9[%c0_80, %c0_81] : memref<128x128xbf16, #tpu.memory_space<vmem>>, vector<128x128xbf16>
    %cst_82 = arith.constant dense<0.000000e+00> : vector<32x128xf32>
    %118 = tpu.matmul %116, %117, %cst_82 {dimension_numbers = #tpu.dot_dimension_numbers<[1], [0], [0], [1], [0, 0, 1, 1], [], []>} : vector<32x128xbf16>, vector<128x128xbf16>, vector<32x128xf32> -> vector<32x128xf32>
    %c0_83 = arith.constant 0 : index
    %c0_84 = arith.constant 0 : index
    %119 = vector.load %arg10[%c0_83, %c0_84] : memref<1x128xf32, #tpu.memory_space<vmem>>, vector<1x128xf32>
    %120 = vector.broadcast %119 : vector<1x128xf32> to vector<32x128xf32>
    %121 = arith.addf %118, %120 : vector<32x128xf32>
    %c0_85 = arith.constant 0 : index
    %c0_86 = arith.constant 0 : index
    %122 = vector.load %arg11[%c0_85, %c0_86] : memref<32x128xf32, #tpu.memory_space<vmem>>, vector<32x128xf32>
    tpu.vector_store %arg11[%c0_85, %c0_86], %121 {strides = array<i32>} : memref<32x128xf32, #tpu.memory_space<vmem>>, vector<32x128xf32>,
    return
  }
}

</mosaic_0001>

<bundles_post_ra>
// kernel: tpu_custom_call.1
= control target key start
LH: loop header
LB: loop body
LE: loop exit
PB: predicated region body
PF: predicated region fallthrough
CT: control target
= control target key end

     0   :  { %16 = vsyncpa [#allocation3], 0  ;;  %s2596_s0 = inlined_call_operand.hbm [shape: bf16[2,32,128], index: 0, kind: input, shape index: {}]   ;;  %s2597_s1 = inlined_call_operand.hbm [shape: bf16[2,128,128], index: 1, kind: input, shape index: {}]   ;;  %s2598_s2 = inlined_call_operand.vmem [shape: f32[2,1,128], index: 2, kind: input, shape index: {}]   ;;  %s2599_s3 = inlined_call_operand.hbm [shape: bf16[2,32,32], index: 3, kind: input, shape index: {}]   ;;  %s2600_s4 = inlined_call_operand.hbm [shape: bf16[2,2,128,128], index: 4, kind: input, shape index: {}]   ;;  %s2601_s5 = inlined_call_operand.vmem [shape: f32[2,2,1,128], index: 5, kind: input, shape index: {}]   ;;  %s2602_s6 = inlined_call_operand.hbm [shape: bf16[128,128], index: 6, kind: input, shape index: {}]   ;;  %s2603_s7 = inlined_call_operand.vmem [shape: f32[1,128], index: 7, kind: input, shape index: {}]   ;;  %s2604_s8 = inlined_call_operand.vmem [shape: f32[1,128], index: 8, kind: input, shape index: {}]   ;;  %s2605_s9 = inlined_call_operand.hbm [shape: bf16[128,128], index: 9, kind: input, shape index: {}]   ;;  %s2606_s10 = inlined_call_operand.vmem [shape: f32[1,128], index: 10, kind: input, shape index: {}]   ;;  %s2607_s11 = inlined_call_operand.hbm [shape: f32[32,128], index: 11, kind: output, shape index: {}]  }
   0x1   :  { %17 = vsyncpa [#allocation6], 0 }
   0x2   :  { %18 = vsyncpa [#allocation9], 0 }
   0x3   :  { %19 = vsyncpa [#allocation12], 0 }
   0x4   :  { %20 = vsyncpa [#allocation4], 0  ;;  %s2231_s17 = smov [#allocation5]   ;;  %s2232_s19 = smov [#allocation8]  }
   0x5   :  { %s38_s18 = sshll.u32 %s2231_s17, 4  ;;  %s64_s20 = sshll.u32 %s2232_s19, 4  ;;  %s39_s18 = int_to_ptr.vmem [resolvable:$true] %s38_s18  ;;  %s2302_s20 = int_to_ptr.vmem [resolvable:$true] %s64_s20 }
   0x6   :  { %s2067_s23 = scalar_lea.hbm %s2597_s1, 2048 }
   0x7   :  { %p2068_p0 = scmp.ne.s32.totalorder %s2597_s1, %s2067_s23  ;;  %p2071_p1 = scmp.lt.u32.totalorder %s2067_s23, %s2597_s1 }
   0x9   :  { %p2073_p2 = pnand %p2071_p1, %p2068_p0 }
   0xb   :  { %2076 = shalt.err (!%p2073_p2)
}
   0xc   :  { %s2077_s28 = scalar_lea.vmem %s39_s18, 2048  ;;  %p2082_p4 = scmp.lt.s32.totalorder %s39_s18, %s39_s18 }
   0xd   :  { %p2078_p3 = scmp.ne.s32.totalorder %s39_s18, %s2077_s28  ;;  %p2083_p5 = scmp.lt.s32.totalorder %s2077_s28, %s2077_s28 }
   0xf   :  { %p2084_p6 = por %p2083_p5, %p2082_p4 }
  0x11   :  { %p2085_p7 = pnand %p2084_p6, %p2078_p3 }
  0x13   :  { %2088 = shalt.err (!%p2085_p7)
}
  0x14   :  { %s2233_s29 = smov 64   ;;  %s2234_s30 = smov 4  }
  0x15   :  { %44 = dma.hbm_to_vmem [thread:$0]  %s2597_s1, 2048, %s39_s18, [#allocation6], %s2233_s29, %s2233_s29, %s2234_s30  }
  0x16   :  { %s2089_s16 = scalar_lea.hbm %s2600_s4, 4096 }
  0x17   :  { %p2090_p8 = scmp.ne.s32.totalorder %s2600_s4, %s2089_s16  ;;  %p2093_p9 = scmp.lt.u32.totalorder %s2089_s16, %s2600_s4 }
  0x19   :  { %p2095_p10 = pnand %p2093_p9, %p2090_p8 }
  0x1b   :  { %2098 = shalt.err (!%p2095_p10)
}
  0x1c   :  { %s2099_s23 = scalar_lea.vmem %s2302_s20, 4096  ;;  %p2104_p12 = scmp.lt.s32.totalorder %s2302_s20, %s2302_s20 }
  0x1d   :  { %p2100_p11 = scmp.ne.s32.totalorder %s2302_s20, %s2099_s23  ;;  %p2105_p13 = scmp.lt.s32.totalorder %s2099_s23, %s2099_s23 }
  0x1f   :  { %p2106_p0 = por %p2105_p13, %p2104_p12 }
  0x21   :  { %p2107_p1 = pnand %p2106_p0, %p2100_p11 }
  0x23   :  { %2110 = shalt.err (!%p2107_p1)
}
  0x24   :  { %70 = dma.hbm_to_vmem [thread:$0]  %s2600_s4, 4096, %s2302_s20, [#allocation9], %s2233_s29, %s2233_s29, %s2234_s30  }
  0x25   :  { %s2235_s24 = smov [#allocation2]   ;;  %s2236_s26 = smov [#allocation7]  }
  0x26   :  { %s26_s25 = sshll.u32 %s2235_s24, 4  ;;  %s52_s27 = sshll.u32 %s2236_s26, 4  ;;  %s27_s25 = int_to_ptr.vmem [resolvable:$true] %s26_s25  ;;  %s2339_s27 = int_to_ptr.vmem [resolvable:$true] %s52_s27 }
  0x27   :  { %s2111_s13 = scalar_lea.hbm %s2596_s0, 512 }
  0x28   :  { %p2112_p2 = scmp.ne.s32.totalorder %s2596_s0, %s2111_s13  ;;  %p2115_p3 = scmp.lt.u32.totalorder %s2111_s13, %s2596_s0 }
  0x2a   :  { %p2117_p4 = pnand %p2115_p3, %p2112_p2 }
  0x2c   :  { %2120 = shalt.err (!%p2117_p4)
}
  0x2d   :  { %s2121_s4 = scalar_lea.vmem %s27_s25, 512  ;;  %p2126_p6 = scmp.lt.s32.totalorder %s27_s25, %s27_s25 }
  0x2e   :  { %p2122_p5 = scmp.ne.s32.totalorder %s27_s25, %s2121_s4  ;;  %p2127_p7 = scmp.lt.s32.totalorder %s2121_s4, %s2121_s4 }
  0x30   :  { %p2128_p8 = por %p2127_p7, %p2126_p6 }
  0x32   :  { %p2129_p9 = pnand %p2128_p8, %p2122_p5 }
  0x34   :  { %2132 = shalt.err (!%p2129_p9)
}
  0x35   :  { %32 = dma.hbm_to_vmem [thread:$0]  %s2596_s0, 512, %s27_s25, [#allocation3], %s2233_s29, %s2233_s29, %s2234_s30  }
  0x36   :  { %s2133_s23 = scalar_lea.hbm %s2599_s3, 512 }
  0x37   :  { %p2134_p10 = scmp.ne.s32.totalorder %s2599_s3, %s2133_s23  ;;  %p2137_p11 = scmp.lt.u32.totalorder %s2133_s23, %s2599_s3 }
  0x39   :  { %p2139_p12 = pnand %p2137_p11, %p2134_p10 }
  0x3b   :  { %2142 = shalt.err (!%p2139_p12)
}
  0x3c   :  { %s2143_s28 = scalar_lea.vmem %s2339_s27, 512  ;;  %p2148_p0 = scmp.lt.s32.totalorder %s2339_s27, %s2339_s27 }
  0x3d   :  { %p2144_p13 = scmp.ne.s32.totalorder %s2339_s27, %s2143_s28  ;;  %p2149_p1 = scmp.lt.s32.totalorder %s2143_s28, %s2143_s28 }
  0x3f   :  { %p2150_p2 = por %p2149_p1, %p2148_p0 }
  0x41   :  { %p2151_p3 = pnand %p2150_p2, %p2144_p13 }
  0x43   :  { %2154 = shalt.err (!%p2151_p3)
}
  0x44   :  { %58 = dma.hbm_to_vmem [thread:$0]  %s2599_s3, 512, %s2339_s27, [#allocation6], %s2233_s29, %s2233_s29, %s2234_s30  }
  0x45   :  { %s2237_s12 = smov [#allocation10]   ;;  %s2238_s14 = smov [#allocation11]  }
  0x46   :  { %s78_s13 = sshll.u32 %s2237_s12, 4  ;;  %s94_s15 = sshll.u32 %s2238_s14, 4  ;;  %s79_s13 = int_to_ptr.vmem [resolvable:$true] %s78_s13  ;;  %s2376_s15 = int_to_ptr.vmem [resolvable:$true] %s94_s15 }
  0x47   :  { %s2155_s4 = scalar_lea.hbm %s2602_s6, 1024 }
  0x48   :  { %p2156_p4 = scmp.ne.s32.totalorder %s2602_s6, %s2155_s4  ;;  %p2159_p5 = scmp.lt.u32.totalorder %s2155_s4, %s2602_s6 }
  0x4a   :  { %p2161_p6 = pnand %p2159_p5, %p2156_p4 }
  0x4c   :  { %2164 = shalt.err (!%p2161_p6)
}
  0x4d   :  { %s2165_s3 = scalar_lea.vmem %s79_s13, 1024  ;;  %p2170_p8 = scmp.lt.s32.totalorder %s79_s13, %s79_s13 }
  0x4e   :  { %p2166_p7 = scmp.ne.s32.totalorder %s79_s13, %s2165_s3  ;;  %p2171_p9 = scmp.lt.s32.totalorder %s2165_s3, %s2165_s3 }
  0x50   :  { %p2172_p10 = por %p2171_p9, %p2170_p8 }
  0x52   :  { %p2173_p11 = pnand %p2172_p10, %p2166_p7 }
  0x54   :  { %2176 = shalt.err (!%p2173_p11)
}
  0x55   :  { %84 = dma.hbm_to_vmem [thread:$0]  %s2602_s6, 1024, %s79_s13, [#allocation9], %s2233_s29, %s2233_s29, %s2234_s30  }
  0x56   :  { %s2177_s24 = scalar_lea.hbm %s2605_s9, 1024 }
  0x57   :  { %p2178_p12 = scmp.ne.s32.totalorder %s2605_s9, %s2177_s24  ;;  %p2181_p13 = scmp.lt.u32.totalorder %s2177_s24, %s2605_s9 }
  0x59   :  { %p2183_p0 = pnand %p2181_p13, %p2178_p12 }
  0x5b   :  { %2186 = shalt.err (!%p2183_p0)
}
  0x5c   :  { %s2187_s12 = scalar_lea.vmem %s2376_s15, 1024  ;;  %p2192_p2 = scmp.lt.s32.totalorder %s2376_s15, %s2376_s15 }
  0x5d   :  { %p2188_p1 = scmp.ne.s32.totalorder %s2376_s15, %s2187_s12  ;;  %p2193_p3 = scmp.lt.s32.totalorder %s2187_s12, %s2187_s12 }
  0x5f   :  { %p2194_p4 = por %p2193_p3, %p2192_p2 }
  0x61   :  { %p2195_p5 = pnand %p2194_p4, %p2188_p1 }
  0x63   :  { %2198 = shalt.err (!%p2195_p5)
}
  0x64   :  { %100 = dma.hbm_to_vmem [thread:$0]  %s2605_s9, 1024, %s2376_s15, [#allocation12], %s2233_s29, %s2233_s29, %s2234_s30  }
  0x65   :  { %2221 = dma.done.wait [#allocation3], 512  }
  0x66   :  { %2222 = vsyncadd [#allocation3], 4294966784 }
  0x67   :  { %2223 = dma.done.wait [#allocation6], 2560  }
  0x68   :  { %2224 = vsyncadd [#allocation6], 4294964736 }
  0x69   :  { %2225 = dma.done.wait [#allocation9], 5120  }
  0x6a   :  { %2226 = vsyncadd [#allocation9], 4294962176 }
  0x6b   :  { %2227 = dma.done.wait [#allocation12], 1024  }
  0x6c   :  { %2228 = vsyncadd [#allocation12], 4294966272  ;;  %v1973_v0 = vld [vmem:[#allocation5] sm:$0xff]   ;;  %v1974_v1 = vld [vmem:[#allocation5 + $0x8] sm:$0xff]   ;;  %vm292_vm0 = vcmask 261120   ;;  %s2239_s18 = smov [#allocation13]  }
  0x6d   :  { %1746 = vmatprep.subr.bf16.mxu0 %v1973_v0  ;;  %v1975_v2 = vld [vmem:[#allocation5 + $0x10] sm:$0xff]   ;;  %v1976_v3 = vld [vmem:[#allocation5 + $0x18] sm:$0xff]   ;;  %v1981_v4 = vld [vmem:[#allocation2] sm:$0xff]   ;;  %s1532_s24 = sshll.u32 %s2239_s18, 4  ;;  %s1533_s24 = int_to_ptr.vmem [resolvable:$true] %s1532_s24 }
  0x6e   :  { %1747 = vmatpush3.bf16.msra.mxu0 %v1973_v0  ;;  %v1977_v5 = vld [vmem:[#allocation5 + $0x20] sm:$0xff]   ;;  %1762 = vmatprep.mubr.bf16.mxu0 %v1981_v4  ;;  %v1978_v6 = vld [vmem:[#allocation5 + $0x28] sm:$0xff]   ;;  %v1979_v7 = vld [vmem:[#allocation5 + $0x30] sm:$0xff]   ;;  %s2199_s26 = scalar_lea.vmem %s1533_s24, 512  ;;  %p2204_p7 = scmp.lt.s32.totalorder %s1533_s24, %s1533_s24 }
  0x6f   :  { %1748 = vmatprep.subr.bf16.mxu0 %v1974_v1  ;;  %v1980_v8 = vld [vmem:[#allocation5 + $0x38] sm:$0xff]   ;;  %v1982_v9 = vld [vmem:[#allocation2 + $0x8] sm:$0xff]   ;;  %v1983_v10 = vld [vmem:[#allocation7] sm:$0xff]   ;;  %p2200_p6 = scmp.ne.s32.totalorder %s1533_s24, %s2199_s26  ;;  %p2205_p8 = scmp.lt.s32.totalorder %s2199_s26, %s2199_s26 }
  0x70   :  { %1770 = vmatprep.mubr.msk.bf16.mxu1 %vm292_vm0, %v1983_v10  ;;  %v1547_v12 = vld [vmem:[%s2598_s2] ss:$0 sm:$0xff]  ;;  %v2417_v23 = vld [vmem:[#allocation7 + $0x8] sm:$0xff]   ;;  %v1987_v25 = vld [vmem:[#allocation8 + $0x10] sm:$0xff]  }
  0x71   :  { %v1985_v22 = vld [vmem:[#allocation8] sm:$0xff]   ;;  %v1986_v24 = vld [vmem:[#allocation8 + $0x8] sm:$0xff]   ;;  %v1988_v26 = vld [vmem:[#allocation8 + $0x18] sm:$0xff]   ;;  %p2206_p9 = por %p2205_p8, %p2204_p7 }
  0x72   :  { %1749 = vmatpush3.bf16.msra.mxu0 %v1974_v1  ;;  %v1989_v27 = vld [vmem:[#allocation8 + $0x20] sm:$0xff]   ;;  %v1990_v28 = vld [vmem:[#allocation8 + $0x28] sm:$0xff]   ;;  %v1991_v29 = vld [vmem:[#allocation8 + $0x30] sm:$0xff]  }
  0x73   :  { %1750 = vmatprep.subr.bf16.mxu0 %v1975_v2  ;;  %v1992_v30 = vld [vmem:[#allocation8 + $0x38] sm:$0xff]   ;;  %v1993_v37 = vld [vmem:[#allocation8 + $0x40] sm:$0xff]   ;;  %v1994_v38 = vld [vmem:[#allocation8 + $0x48] sm:$0xff]   ;;  %p2207_p10 = pnand %p2206_p9, %p2200_p6 }
  0x74   :  { %v1995_v39 = vld [vmem:[#allocation8 + $0x50] sm:$0xff]   ;;  %v1996_v40 = vld [vmem:[#allocation8 + $0x58] sm:$0xff]   ;;  %v1997_v41 = vld [vmem:[#allocation8 + $0x60] sm:$0xff]  }
  0x75   :  { %v1998_v42 = vld [vmem:[#allocation8 + $0x68] sm:$0xff]   ;;  %v1999_v43 = vld [vmem:[#allocation8 + $0x70] sm:$0xff]   ;;  %v1562_v44 = vld [vmem:[%s2601_s5] ss:$0 sm:$0xff] }
  0x76   :  { %1751 = vmatpush3.bf16.msra.mxu0 %v1975_v2  ;;  %v2000_v59 = vld [vmem:[#allocation8 + $0x78] sm:$0xff]   ;;  %v2001_v60 = vld [vmem:[#allocation5 + $0x40] sm:$0xff]   ;;  %v2429_v62 = vld [vmem:[#allocation10 + $0x8] sm:$0xff]  }
  0x77   :  { %1752 = vmatprep.subr.bf16.mxu0 %v1976_v3  ;;  %v2427_v61 = vld [vmem:[#allocation10] sm:$0xff]   ;;  %v2434_v63 = vld [vmem:[#allocation10 + $0x10] sm:$0xff]   ;;  %v2438_v0 = vld [vmem:[#allocation10 + $0x18] sm:$0xff]  }
  0x78   :  { %v2442_v1 = vld [vmem:[#allocation10 + $0x20] sm:$0xff]   ;;  %v2446_v2 = vld [vmem:[#allocation10 + $0x28] sm:$0xff]  }
  0x7a   :  { %1753 = vmatpush3.bf16.msra.mxu0 %v1976_v3 }
  0x7b   :  { %1754 = vmatprep.subr.bf16.mxu0 %v1977_v5 }
  0x7e   :  { %1755 = vmatpush3.bf16.msra.mxu0 %v1977_v5 }
  0x7f   :  { %1756 = vmatprep.subr.bf16.mxu0 %v1978_v6 }
  0x82   :  { %1757 = vmatpush3.bf16.msra.mxu0 %v1978_v6 }
  0x83   :  { %1758 = vmatprep.subr.bf16.mxu0 %v1979_v7 }
  0x86   :  { %1759 = vmatpush3.bf16.msra.mxu0 %v1979_v7 }
  0x87   :  { %1760 = vmatprep.subr.bf16.mxu0 %v1980_v8 }
  0x8a   :  { %1761 = vmatpush3.bf16.msra.mxu0 %v1980_v8 }
  0x8b   :  { %1802 = vmatprep.subr.bf16.mxu0 %v1993_v37 }
  0x8d   :  { %1763 = vmatmul.mubr.bf16.vlgmr.msra.gmra.mrb[0].mxu0 %v1982_v9  ;;  %v2009_v9 = vld [vmem:[#allocation2 + $0x10] sm:$0xff]  }
  0x8e   :  { %1803 = vmatpush3.bf16.msra.mxu0 %v1993_v37  ;;  %v1594_v37 = vld [vmem:[%s2598_s2 + $0x1] ss:$0 sm:$0xff] }
  0x8f   :  { %1804 = vmatprep.subr.bf16.mxu0 %v1994_v38 }
  0x92   :  { %1805 = vmatpush3.bf16.msra.mxu0 %v1994_v38 }
  0x93   :  { %1806 = vmatprep.subr.bf16.mxu0 %v1995_v39 }
  0x96   :  { %1807 = vmatpush3.bf16.msra.mxu0 %v1995_v39 }
  0x97   :  { %1808 = vmatprep.subr.bf16.mxu0 %v1996_v40 }
  0x9a   :  { %1809 = vmatpush3.bf16.msra.mxu0 %v1996_v40 }
  0x9b   :  { %1810 = vmatprep.subr.bf16.mxu0 %v1997_v41 }
  0x9e   :  { %1811 = vmatpush3.bf16.msra.mxu0 %v1997_v41 }
  0x9f   :  { %1812 = vmatprep.subr.bf16.mxu0 %v1998_v42 }
  0xa2   :  { %1813 = vmatpush3.bf16.msra.mxu0 %v1998_v42 }
  0xa3   :  { %1814 = vmatprep.subr.bf16.mxu0 %v1999_v43 }
  0xa6   :  { %1815 = vmatpush3.bf16.msra.mxu0 %v1999_v43 }
  0xa7   :  { %1816 = vmatprep.subr.bf16.mxu0 %v2000_v59 }
  0xaa   :  { %1817 = vmatpush3.bf16.msra.mxu0 %v2000_v59 }
  0xab   :  { %1842 = vmatprep.subr.bf16.mxu0 %v2001_v60 }
 0x160   :  { %v1764_v11 = vpop.f32.mrb[0].mxu0 }
 0x161   :  { %v261_v13 = vpop.f32.mrb[1].mxu0  ;;  %v270_v15 = vadd.f32 %v1764_v11, %v1547_v12  ;;  %v2003_v11 = vld [vmem:[#allocation5 + $0x50] sm:$0xff]  }
 0x162   :  { %v1765_v14 = vpop.f32.mrb[2].mxu0  ;;  %v262_v18 = vadd.f32 %v1547_v12, %v261_v13  ;;  %v2005_v13 = vld [vmem:[#allocation5 + $0x60] sm:$0xff]  }
 0x163   :  { %v273_v16 = vadd.f32 %v1765_v14, %v1547_v12  ;;  %v264_v17 = vpop.f32.mrb[3].mxu0  ;;  %v2006_v14 = vld [vmem:[#allocation5 + $0x68] sm:$0xff]  }
 0x164   :  { %v265_v19 = vadd.f32 %v1547_v12, %v264_v17  ;;  %v2004_v12 = vld [vmem:[#allocation5 + $0x58] sm:$0xff]  }
 0x165   :  { %v281_v20 = vpack.c.bf16 %v273_v16, %v270_v15  ;;  %v2007_v15 = vld [vmem:[#allocation5 + $0x70] sm:$0xff]   ;;  %v2008_v16 = vld [vmem:[#allocation5 + $0x78] sm:$0xff]  }
 0x166   :  { %v280_v21 = vpack.c.bf16 %v265_v19, %v262_v18  ;;  %v2010_v17 = vld [vmem:[#allocation2 + $0x18] sm:$0xff]   ;;  %v2451_v18 = vld [vmem:[#allocation10 + $0x30] sm:$0xff]  }
 0x167   :  { %v2455_v19 = vld [vmem:[#allocation10 + $0x38] sm:$0xff]  }
 0x168   :  { %1766 = vmatprep.subr.bf16.mxu1 %v280_v21 }
 0x169   :  { %1767 = vmatpush3.bf16.msra.mxu1 %v280_v21 }
 0x16a   :  { %1768 = vmatprep.subr.bf16.mxu1 %v281_v20 }
 0x16d   :  { %1769 = vmatpush3.bf16.msra.mxu1 %v281_v20  ;;  %v1574_v20 = vld [vmem:[%s2601_s5 + $0x1] ss:$0 sm:$0xff] }
 0x16e   :  { %1774 = vmatprep.subr.bf16.mxu1 %v1985_v22 }
 0x170   :  { %1771 = vmatmul.mubr.msk.bf16.vlgmr.msra.gmra.mrb[0].mxu1 %vm292_vm0, %v2417_v23 }
 0x171   :  { %1775 = vmatpush3.bf16.msra.mxu1 %v1985_v22 }
 0x172   :  { %1776 = vmatprep.subr.bf16.mxu1 %v1986_v24 }
 0x175   :  { %1777 = vmatpush3.bf16.msra.mxu1 %v1986_v24 }
 0x176   :  { %1778 = vmatprep.subr.bf16.mxu1 %v1987_v25 }
 0x179   :  { %1779 = vmatpush3.bf16.msra.mxu1 %v1987_v25 }
 0x17a   :  { %1780 = vmatprep.subr.bf16.mxu1 %v1988_v26 }
 0x17d   :  { %1781 = vmatpush3.bf16.msra.mxu1 %v1988_v26 }
 0x17e   :  { %1782 = vmatprep.subr.bf16.mxu1 %v1989_v27 }
 0x181   :  { %1783 = vmatpush3.bf16.msra.mxu1 %v1989_v27 }
 0x182   :  { %1784 = vmatprep.subr.bf16.mxu1 %v1990_v28 }
 0x185   :  { %1785 = vmatpush3.bf16.msra.mxu1 %v1990_v28 }
 0x186   :  { %1786 = vmatprep.subr.bf16.mxu1 %v1991_v29 }
 0x189   :  { %1787 = vmatpush3.bf16.msra.mxu1 %v1991_v29 }
 0x18a   :  { %1788 = vmatprep.subr.bf16.mxu1 %v1992_v30 }
 0x18d   :  { %1789 = vmatpush3.bf16.msra.mxu1 %v1992_v30 }
 0x243   :  { %v1772_v31 = vpop.f32.mrb[0].mxu1 }
 0x244   :  { %v333_v32 = vpop.f32.mrb[1].mxu1 }
 0x245   :  { %v1773_v33 = vpop.f32.mrb[2].mxu1 }
 0x246   :  { %v349_v34 = vpack.c.bf16 %v1773_v33, %v1772_v31  ;;  %v336_v35 = vpop.f32.mrb[3].mxu1 }
 0x247   :  { %v348_v36 = vpack.c.bf16 %v336_v35, %v333_v32 }
 0x249   :  { %1790 = vmatprep.mubr.bf16.mxu1 %v348_v36 }
 0x24a   :  { %1791 = vmatmul.mubr.bf16.vlgmr.msra.gmra.mrb[4].mxu1 %v349_v34  ;;  %v2478_v34 = vld [vmem:[#allocation7 + $0x10] sm:$0xff]  }
 0x24b   :  { %1798 = vmatprep.mubr.msk.bf16.mxu1 %vm292_vm0, %v1983_v10  ;;  %v2002_v10 = vld [vmem:[#allocation5 + $0x48] sm:$0xff]  }
 0x31d   :  { %v1792_v45 = vpop.f32.mrb[4].mxu1 }
 0x31e   :  { %v464_v46 = vadd.f32 %v1792_v45, %v1562_v44  ;;  %v455_v47 = vpop.f32.mrb[5].mxu1 }
 0x31f   :  { %v456_v48 = vadd.f32 %v1562_v44, %v455_v47  ;;  %v1793_v49 = vpop.f32.mrb[6].mxu1  ;;  %v2489_v47 = vld [vmem:[#allocation7 + $0x18] sm:$0xff]  }
 0x320   :  { %v467_v50 = vadd.f32 %v1793_v49, %v1562_v44  ;;  %v458_v51 = vpop.f32.mrb[7].mxu1  ;;  %v472_v53 = vmax.f32 %v464_v46, 0.0  ;;  %v2022_v49 = vld [vmem:[#allocation8 + $0x88] sm:$0xff]  }
 0x321   :  { %v459_v52 = vadd.f32 %v1562_v44, %v458_v51  ;;  %v470_v55 = vmax.f32 %v456_v48, 0.0  ;;  %v2021_v48 = vld [vmem:[#allocation8 + $0x80] sm:$0xff]   ;;  %v2024_v51 = vld [vmem:[#allocation8 + $0x98] sm:$0xff]  }
 0x322   :  { %v473_v54 = vmax.f32 %v467_v50, 0.0  ;;  %v2023_v50 = vld [vmem:[#allocation8 + $0x90] sm:$0xff]  }
 0x323   :  { %v471_v56 = vmax.f32 %v459_v52, 0.0  ;;  %v2025_v52 = vld [vmem:[#allocation8 + $0xa0] sm:$0xff]  }
 0x324   :  { %v475_v57 = vpack.c.bf16 %v473_v54, %v472_v53  ;;  %v2026_v53 = vld [vmem:[#allocation8 + $0xa8] sm:$0xff]   ;;  %v2027_v54 = vld [vmem:[#allocation8 + $0xb0] sm:$0xff]  }
 0x325   :  { %v474_v58 = vpack.c.bf16 %v471_v56, %v470_v55  ;;  %v2028_v55 = vld [vmem:[#allocation8 + $0xb8] sm:$0xff]   ;;  %v2496_v56 = vld [vmem:[%s2603_s7] ss:$0 sm:$0xff] }
 0x327   :  { %1794 = vmatprep.subr.bf16.mxu1 %v474_v58 }
 0x328   :  { %1795 = vmatpush3.bf16.msra.mxu1 %v474_v58 }
 0x329   :  { %1796 = vmatprep.subr.bf16.mxu1 %v475_v57 }
 0x32c   :  { %1797 = vmatpush3.bf16.msra.mxu1 %v475_v57 }
 0x32d   :  { %1822 = vmatprep.subr.bf16.mxu1 %v2427_v61 }
 0x32f   :  { %1799 = vmatmul.mubr.msk.bf16.vlgmr.msra.gmra.mrb[8].mxu1 %vm292_vm0, %v2417_v23 }
 0x330   :  { %1823 = vmatpush3.bf16.msra.mxu1 %v2427_v61 }
 0x331   :  { %1824 = vmatprep.subr.bf16.mxu1 %v2429_v62 }
 0x334   :  { %1825 = vmatpush3.bf16.msra.mxu1 %v2429_v62 }
 0x335   :  { %1826 = vmatprep.subr.bf16.mxu1 %v2434_v63 }
 0x338   :  { %1827 = vmatpush3.bf16.msra.mxu1 %v2434_v63 }
 0x339   :  { %1828 = vmatprep.subr.bf16.mxu1 %v2438_v0 }
 0x33c   :  { %1829 = vmatpush3.bf16.msra.mxu1 %v2438_v0 }
 0x33d   :  { %1830 = vmatprep.subr.bf16.mxu1 %v2442_v1 }
 0x340   :  { %1831 = vmatpush3.bf16.msra.mxu1 %v2442_v1 }
 0x341   :  { %1832 = vmatprep.subr.bf16.mxu1 %v2446_v2 }
 0x344   :  { %1833 = vmatpush3.bf16.msra.mxu1 %v2446_v2 }
 0x345   :  { %1834 = vmatprep.subr.bf16.mxu1 %v2451_v18 }
 0x348   :  { %1835 = vmatpush3.bf16.msra.mxu1 %v2451_v18 }
 0x349   :  { %1836 = vmatprep.subr.bf16.mxu1 %v2455_v19 }
 0x34c   :  { %1837 = vmatpush3.bf16.msra.mxu1 %v2455_v19 }
 0x402   :  { %v1800_v3 = vpop.f32.mrb[8].mxu1 }
 0x403   :  { %v510_v4 = vpop.f32.mrb[9].mxu1 }
 0x404   :  { %v1801_v5 = vpop.f32.mrb[10].mxu1 }
 0x405   :  { %v526_v6 = vpack.c.bf16 %v1801_v5, %v1800_v3  ;;  %v513_v7 = vpop.f32.mrb[11].mxu1 }
 0x406   :  { %v525_v8 = vpack.c.bf16 %v513_v7, %v510_v4 }
 0x408   :  { %1818 = vmatprep.mubr.bf16.mxu0 %v525_v8  ;;  %v2505_v8 = vld [vmem:[%s2604_s8] ss:$0 sm:$0xff] }
 0x409   :  { %1819 = vmatmul.mubr.bf16.vlgmr.msra.gmra.mrb[4].mxu0 %v526_v6 }
 0x40a   :  { %1843 = vmatpush3.bf16.msra.mxu0 %v2001_v60  ;;  %1858 = vmatprep.mubr.bf16.mxu0 %v2009_v9 }
 0x40b   :  { %1844 = vmatprep.subr.bf16.mxu0 %v2002_v10 }
 0x40e   :  { %1845 = vmatpush3.bf16.msra.mxu0 %v2002_v10 }
 0x40f   :  { %1846 = vmatprep.subr.bf16.mxu0 %v2003_v11 }
 0x412   :  { %1847 = vmatpush3.bf16.msra.mxu0 %v2003_v11 }
 0x413   :  { %1848 = vmatprep.subr.bf16.mxu0 %v2004_v12 }
 0x416   :  { %1849 = vmatpush3.bf16.msra.mxu0 %v2004_v12 }
 0x417   :  { %1850 = vmatprep.subr.bf16.mxu0 %v2005_v13 }
 0x41a   :  { %1851 = vmatpush3.bf16.msra.mxu0 %v2005_v13 }
 0x41b   :  { %1852 = vmatprep.subr.bf16.mxu0 %v2006_v14 }
 0x41e   :  { %1853 = vmatpush3.bf16.msra.mxu0 %v2006_v14 }
 0x41f   :  { %1854 = vmatprep.subr.bf16.mxu0 %v2007_v15 }
 0x422   :  { %1855 = vmatpush3.bf16.msra.mxu0 %v2007_v15 }
 0x423   :  { %1856 = vmatprep.subr.bf16.mxu0 %v2008_v16 }
 0x426   :  { %1857 = vmatpush3.bf16.msra.mxu0 %v2008_v16 }
 0x429   :  { %1859 = vmatmul.mubr.bf16.vlgmr.msra.gmra.mrb[8].mxu0 %v2010_v17 }
 0x4dc   :  { %v1820_v21 = vpop.f32.mrb[4].mxu0 }
 0x4dd   :  { %v634_v22 = vpop.f32.mrb[5].mxu0  ;;  %v2464_v25 = vadd.f32 %v1820_v21, %v1574_v20 }
 0x4de   :  { %v2462_v23 = vadd.f32 %v1574_v20, %v634_v22  ;;  %v1821_v24 = vpop.f32.mrb[6].mxu0 }
 0x4df   :  { %v2466_v26 = vadd.f32 %v1821_v24, %v1574_v20  ;;  %v637_v27 = vpop.f32.mrb[7].mxu0  ;;  %v651_v32 = vmax.f32 %v2464_v25, 0.0  ;;  %v1631_v25 = vld [vmem:[%s2606_s10] ss:$0 sm:$0xff] }
 0x4e0   :  { %v2468_v28 = vadd.f32 %v1574_v20, %v637_v27  ;;  %v649_v30 = vmax.f32 %v2462_v23, 0.0 }
 0x4e1   :  { %v652_v29 = vmax.f32 %v2466_v26, 0.0 }
 0x4e2   :  { %v650_v31 = vmax.f32 %v2468_v28, 0.0 }
 0x4e3   :  { %v654_v35 = vpack.c.bf16 %v652_v29, %v651_v32 }
 0x4e4   :  { %v653_v33 = vpack.c.bf16 %v650_v31, %v649_v30 }
 0x4e6   :  { %1838 = vmatprep.mubr.bf16.mxu1 %v653_v33 }
 0x4e7   :  { %1839 = vmatmul.mubr.bf16.vlgmr.msra.gmra.mrb[12].mxu1 %v654_v35 }
 0x4e8   :  { %1866 = vmatprep.mubr.msk.bf16.mxu1 %vm292_vm0, %v2478_v34 }
 0x4fc   :  { %v1860_v36 = vpop.f32.mrb[8].mxu0 }
 0x4fd   :  { %v910_v38 = vpop.f32.mrb[9].mxu0  ;;  %v919_v40 = vadd.f32 %v1860_v36, %v1594_v37  ;;  %v2029_v36 = vld [vmem:[#allocation8 + $0xc0] sm:$0xff]  }
 0x4fe   :  { %v1861_v39 = vpop.f32.mrb[10].mxu0  ;;  %v911_v43 = vadd.f32 %v1594_v37, %v910_v38  ;;  %1898 = vmatprep.subr.bf16.mxu0 %v2029_v36  ;;  %v2031_v38 = vld [vmem:[#allocation8 + $0xd0] sm:$0xff]  }
 0x4ff   :  { %v922_v41 = vadd.f32 %v1861_v39, %v1594_v37  ;;  %v913_v42 = vpop.f32.mrb[11].mxu0  ;;  %1899 = vmatpush3.bf16.msra.mxu0 %v2029_v36  ;;  %v2032_v39 = vld [vmem:[#allocation8 + $0xd8] sm:$0xff]  }
 0x500   :  { %v914_v44 = vadd.f32 %v1594_v37, %v913_v42  ;;  %v2030_v37 = vld [vmem:[#allocation8 + $0xc8] sm:$0xff]   ;;  %v2035_v42 = vld [vmem:[#allocation8 + $0xf0] sm:$0xff]  }
 0x501   :  { %v931_v45 = vpack.c.bf16 %v922_v41, %v919_v40  ;;  %1900 = vmatprep.subr.bf16.mxu0 %v2030_v37  ;;  %v2033_v40 = vld [vmem:[#allocation8 + $0xe0] sm:$0xff]   ;;  %v2034_v41 = vld [vmem:[#allocation8 + $0xe8] sm:$0xff]  }
 0x502   :  { %v930_v46 = vpack.c.bf16 %v914_v44, %v911_v43 }
 0x503   :  { %1901 = vmatpush3.bf16.msra.mxu0 %v2030_v37 }
 0x504   :  { %1862 = vmatprep.subr.bf16.mxu1 %v930_v46  ;;  %1902 = vmatprep.subr.bf16.mxu0 %v2031_v38 }
 0x505   :  { %1863 = vmatpush3.bf16.msra.mxu1 %v930_v46 }
 0x506   :  { %1864 = vmatprep.subr.bf16.mxu1 %v931_v45 }
 0x507   :  { %1903 = vmatpush3.bf16.msra.mxu0 %v2031_v38 }
 0x508   :  { %1904 = vmatprep.subr.bf16.mxu0 %v2032_v39 }
 0x509   :  { %1865 = vmatpush3.bf16.msra.mxu1 %v931_v45 }
 0x50a   :  { %1870 = vmatprep.subr.bf16.mxu1 %v2021_v48 }
 0x50b   :  { %1905 = vmatpush3.bf16.msra.mxu0 %v2032_v39 }
 0x50c   :  { %1867 = vmatmul.mubr.msk.bf16.vlgmr.msra.gmra.mrb[16].mxu1 %vm292_vm0, %v2489_v47  ;;  %1906 = vmatprep.subr.bf16.mxu0 %v2033_v40 }
 0x50d   :  { %1871 = vmatpush3.bf16.msra.mxu1 %v2021_v48 }
 0x50e   :  { %1872 = vmatprep.subr.bf16.mxu1 %v2022_v49 }
 0x50f   :  { %1907 = vmatpush3.bf16.msra.mxu0 %v2033_v40 }
 0x510   :  { %1908 = vmatprep.subr.bf16.mxu0 %v2034_v41 }
 0x511   :  { %1873 = vmatpush3.bf16.msra.mxu1 %v2022_v49 }
 0x512   :  { %1874 = vmatprep.subr.bf16.mxu1 %v2023_v50 }
 0x513   :  { %1909 = vmatpush3.bf16.msra.mxu0 %v2034_v41 }
 0x514   :  { %1910 = vmatprep.subr.bf16.mxu0 %v2035_v42 }
 0x515   :  { %1875 = vmatpush3.bf16.msra.mxu1 %v2023_v50  ;;  %v1610_v50 = vld [vmem:[%s2601_s5 + $0x2] ss:$0 sm:$0xff] }
 0x516   :  { %1876 = vmatprep.subr.bf16.mxu1 %v2024_v51 }
 0x517   :  { %1911 = vmatpush3.bf16.msra.mxu0 %v2035_v42 }
 0x519   :  { %1877 = vmatpush3.bf16.msra.mxu1 %v2024_v51 }
 0x51a   :  { %1878 = vmatprep.subr.bf16.mxu1 %v2025_v52 }
 0x51d   :  { %1879 = vmatpush3.bf16.msra.mxu1 %v2025_v52 }
 0x51e   :  { %1880 = vmatprep.subr.bf16.mxu1 %v2026_v53 }
 0x521   :  { %1881 = vmatpush3.bf16.msra.mxu1 %v2026_v53 }
 0x522   :  { %1882 = vmatprep.subr.bf16.mxu1 %v2027_v54 }
 0x525   :  { %1883 = vmatpush3.bf16.msra.mxu1 %v2027_v54 }
 0x526   :  { %1884 = vmatprep.subr.bf16.mxu1 %v2028_v55 }
 0x529   :  { %1885 = vmatpush3.bf16.msra.mxu1 %v2028_v55 }
 0x5ba   :  { %v1840_v57 = vpop.f32.mrb[12].mxu1 }
 0x5bb   :  { %v752_v58 = vadd.f32 %v1840_v57, %v2496_v56  ;;  %v743_v59 = vpop.f32.mrb[13].mxu1 }
 0x5bc   :  { %v744_v60 = vadd.f32 %v2496_v56, %v743_v59  ;;  %v1841_v3 = vpop.f32.mrb[14].mxu1 }
 0x5bd   :  { %v746_v4 = vpop.f32.mrb[15].mxu1  ;;  %v755_v5 = vadd.f32 %v1841_v3, %v2496_v56 }
 0x5be   :  { %2045 = vtanh.f32 %v744_v60  ;;  %v747_v6 = vadd.f32 %v2496_v56, %v746_v4 }
 0x5bf   :  { %2047 = vtanh.f32 %v752_v58 }
 0x5c0   :  { %2049 = vtanh.f32 %v747_v6 }
 0x5c1   :  { %2051 = vtanh.f32 %v755_v5 }
 0x5c8   :  { %v2046_v7 = vpop.eup %2045 }
 0x5c9   :  { %v2048_v9 = vpop.eup %2047  ;;  %v768_v11 = vmul.f32 %v2046_v7, %v2505_v8 }
 0x5ca   :  { %v2050_v10 = vpop.eup %2049  ;;  %v770_v14 = vmul.f32 %v2048_v9, %v2505_v8 }
 0x5cb   :  { %v769_v12 = vmul.f32 %v2050_v10, %v2505_v8  ;;  %v2052_v13 = vpop.eup %2051 }
 0x5cc   :  { %v771_v16 = vmul.f32 %v2052_v13, %v2505_v8 }
 0x5cd   :  { %v772_v15 = vadd.f32 %v769_v12, %v768_v11 }
 0x5cf   :  { %v773_v17 = vadd.f32 %v772_v15, %v770_v14 }
 0x5d1   :  { %v774_v20 = vadd.f32 %v773_v17, %v771_v16 }
 0x5d3   :  { %775 = vadd.xlane.f32.xlu0 %v774_v20 }
 0x5df   :  { %v1868_v21 = vpop.f32.mrb[16].mxu1 }
 0x5e0   :  { %v982_v22 = vpop.f32.mrb[17].mxu1 }
 0x5e1   :  { %v1869_v24 = vpop.f32.mrb[18].mxu1 }
 0x5e2   :  { %v998_v27 = vpack.c.bf16 %v1869_v24, %v1868_v21  ;;  %v985_v33 = vpop.f32.mrb[19].mxu1 }
 0x5e3   :  { %v997_v35 = vpack.c.bf16 %v985_v33, %v982_v22 }
 0x5e5   :  { %1886 = vmatprep.mubr.bf16.mxu1 %v997_v35 }
 0x5e6   :  { %1887 = vmatmul.mubr.bf16.vlgmr.msra.gmra.mrb[20].mxu1 %v998_v27 }
 0x5e7   :  { %1894 = vmatprep.mubr.msk.bf16.mxu1 %vm292_vm0, %v2478_v34 }
 0x660   :  { %v776_v43 = vpop.xlane.xlu0 %775 }
 0x661   :  { %v777_v34 = vrot.slane %v776_v43, 4 }
 0x663   :  { %v778_v44 = vadd.f32 %v777_v34, %v776_v43 }
 0x665   :  { %v779_v45 = vrot.slane %v778_v44, 2 }
 0x667   :  { %v780_v46 = vadd.f32 %v779_v45, %v778_v44 }
 0x669   :  { %v781_v48 = vrot.slane %v780_v46, 1 }
 0x66b   :  { %v782_v49 = vadd.f32 %v781_v48, %v780_v46 }
 0x66d   :  { %1958 = vpush %v782_v49 }
 0x6b9   :  { %v1888_v51 = vpop.f32.mrb[20].mxu1 }
 0x6ba   :  { %v1115_v52 = vadd.f32 %v1888_v51, %v1610_v50  ;;  %v1106_v53 = vpop.f32.mrb[21].mxu1 }
 0x6bb   :  { %v1107_v54 = vadd.f32 %v1610_v50, %v1106_v53  ;;  %v1889_v55 = vpop.f32.mrb[22].mxu1  ;;  %v2039_v53 = vld [vmem:[#allocation11 + $0x10] sm:$0xff]  }
 0x6bc   :  { %v1118_v57 = vadd.f32 %v1889_v55, %v1610_v50  ;;  %v1109_v58 = vpop.f32.mrb[23].mxu1  ;;  %v1123_v60 = vmax.f32 %v1115_v52, 0.0  ;;  %v2038_v52 = vld [vmem:[#allocation11 + $0x8] sm:$0xff]   ;;  %v2041_v55 = vld [vmem:[#allocation11 + $0x20] sm:$0xff]  }
 0x6bd   :  { %v1110_v59 = vadd.f32 %v1610_v50, %v1109_v58  ;;  %v1121_v4 = vmax.f32 %v1107_v54, 0.0  ;;  %v2040_v54 = vld [vmem:[#allocation11 + $0x18] sm:$0xff]  }
 0x6be   :  { %v1124_v3 = vmax.f32 %v1118_v57, 0.0  ;;  %v2042_v57 = vld [vmem:[#allocation11 + $0x28] sm:$0xff]   ;;  %v2044_v58 = vld [vmem:[#allocation11 + $0x38] sm:$0xff]  }
 0x6bf   :  { %v1122_v5 = vmax.f32 %v1110_v59, 0.0 }
 0x6c0   :  { %v1126_v6 = vpack.c.bf16 %v1124_v3, %v1123_v60 }
 0x6c1   :  { %v1125_v7 = vpack.c.bf16 %v1122_v5, %v1121_v4 }
 0x6c3   :  { %1890 = vmatprep.subr.bf16.mxu1 %v1125_v7 }
 0x6c4   :  { %1891 = vmatpush3.bf16.msra.mxu1 %v1125_v7 }
 0x6c5   :  { %1892 = vmatprep.subr.bf16.mxu1 %v1126_v6 }
 0x6c8   :  { %1893 = vmatpush3.bf16.msra.mxu1 %v1126_v6 }
 0x6c9   :  { %1918 = vmatprep.subr.bf16.mxu1 %v2427_v61 }
 0x6cb   :  { %1895 = vmatmul.mubr.msk.bf16.vlgmr.msra.gmra.mrb[24].mxu1 %vm292_vm0, %v2489_v47 }
 0x6cc   :  { %1919 = vmatpush3.bf16.msra.mxu1 %v2427_v61  ;;  %v2036_v61 = vld [vmem:[#allocation8 + $0xf8] sm:$0xff]  }
 0x6cd   :  { %1920 = vmatprep.subr.bf16.mxu1 %v2429_v62  ;;  %1912 = vmatprep.subr.bf16.mxu0 %v2036_v61 }
 0x6ce   :  { %1913 = vmatpush3.bf16.msra.mxu0 %v2036_v61 }
 0x6d0   :  { %1921 = vmatpush3.bf16.msra.mxu1 %v2429_v62 }
 0x6d1   :  { %1922 = vmatprep.subr.bf16.mxu1 %v2434_v63 }
 0x6d4   :  { %1923 = vmatpush3.bf16.msra.mxu1 %v2434_v63 }
 0x6d5   :  { %1924 = vmatprep.subr.bf16.mxu1 %v2438_v0 }
 0x6d8   :  { %1925 = vmatpush3.bf16.msra.mxu1 %v2438_v0 }
 0x6d9   :  { %1926 = vmatprep.subr.bf16.mxu1 %v2442_v1 }
 0x6dc   :  { %1927 = vmatpush3.bf16.msra.mxu1 %v2442_v1 }
 0x6dd   :  { %1928 = vmatprep.subr.bf16.mxu1 %v2446_v2 }
 0x6e0   :  { %1929 = vmatpush3.bf16.msra.mxu1 %v2446_v2  ;;  %v1622_v2 = vld [vmem:[%s2601_s5 + $0x3] ss:$0 sm:$0xff]  ;;  %s1959_s5 = spop %1958 }
 0x6e1   :  { %1930 = vmatprep.subr.bf16.mxu1 %v2451_v18  ;;  %v784_v61 = vstv %s1959_s5 }
 0x6e4   :  { %1931 = vmatpush3.bf16.msra.mxu1 %v2451_v18 }
 0x6e5   :  { %1932 = vmatprep.subr.bf16.mxu1 %v2455_v19 }
 0x6e8   :  { %1933 = vmatpush3.bf16.msra.mxu1 %v2455_v19 }
 0x79e   :  { %v1896_v62 = vpop.f32.mrb[24].mxu1 }
 0x79f   :  { %v1161_v63 = vpop.f32.mrb[25].mxu1 }
 0x7a0   :  { %v1897_v0 = vpop.f32.mrb[26].mxu1 }
 0x7a1   :  { %v1177_v47 = vpack.c.bf16 %v1897_v0, %v1896_v62  ;;  %v1164_v1 = vpop.f32.mrb[27].mxu1 }
 0x7a2   :  { %v1176_v9 = vpack.c.bf16 %v1164_v1, %v1161_v63  ;;  %v785_v63 = vmul.f32 0.03125, %v784_v61 }
 0x7a4   :  { %1914 = vmatprep.mubr.bf16.mxu0 %v1176_v9 }
 0x7a5   :  { %1915 = vmatmul.mubr.bf16.vlgmr.msra.gmra.mrb[12].mxu0 %v1177_v47 }
 0x878   :  { %v1916_v18 = vpop.f32.mrb[12].mxu0 }
 0x879   :  { %v1285_v10 = vpop.f32.mrb[13].mxu0  ;;  %v2539_v12 = vadd.f32 %v1916_v18, %v1622_v2 }
 0x87a   :  { %v2537_v11 = vadd.f32 %v1622_v2, %v1285_v10  ;;  %v1917_v19 = vpop.f32.mrb[14].mxu0 }
 0x87b   :  { %v2541_v13 = vadd.f32 %v1917_v19, %v1622_v2  ;;  %v1288_v14 = vpop.f32.mrb[15].mxu0  ;;  %v1302_v21 = vmax.f32 %v2539_v12, 0.0 }
 0x87c   :  { %v2543_v15 = vadd.f32 %v1622_v2, %v1288_v14  ;;  %v1300_v17 = vmax.f32 %v2537_v11, 0.0 }
 0x87d   :  { %v1303_v16 = vmax.f32 %v2541_v13, 0.0 }
 0x87e   :  { %v1301_v20 = vmax.f32 %v2543_v15, 0.0 }
 0x87f   :  { %v1305_v24 = vpack.c.bf16 %v1303_v16, %v1302_v21 }
 0x880   :  { %v1304_v22 = vpack.c.bf16 %v1301_v20, %v1300_v17 }
 0x882   :  { %1934 = vmatprep.mubr.bf16.mxu1 %v1304_v22 }
 0x883   :  { %1935 = vmatmul.mubr.bf16.vlgmr.msra.gmra.mrb[28].mxu1 %v1305_v24 }
 0x956   :  { %v1936_v27 = vpop.f32.mrb[28].mxu1 }
 0x957   :  { %v1349_v33 = vadd.f32 %v1936_v27, %v2496_v56  ;;  %v1340_v35 = vpop.f32.mrb[29].mxu1 }
 0x958   :  { %v1341_v36 = vadd.f32 %v2496_v56, %v1340_v35  ;;  %v1937_v37 = vpop.f32.mrb[30].mxu1 }
 0x959   :  { %v1343_v38 = vpop.f32.mrb[31].mxu1  ;;  %v1352_v39 = vadd.f32 %v1937_v37, %v2496_v56 }
 0x95a   :  { %2053 = vtanh.f32 %v1341_v36  ;;  %v1344_v40 = vadd.f32 %v2496_v56, %v1343_v38  ;;  %v2037_v56 = vld [vmem:[#allocation11] sm:$0xff]  }
 0x95b   :  { %2055 = vtanh.f32 %v1349_v33  ;;  %1938 = vmatprep.subr.bf16.mxu0 %v2037_v56 }
 0x95c   :  { %2057 = vtanh.f32 %v1344_v40  ;;  %1939 = vmatpush3.bf16.msra.mxu0 %v2037_v56 }
 0x95d   :  { %2059 = vtanh.f32 %v1352_v39  ;;  %1940 = vmatprep.subr.bf16.mxu0 %v2038_v52 }
 0x960   :  { %1941 = vmatpush3.bf16.msra.mxu0 %v2038_v52 }
 0x961   :  { %1942 = vmatprep.subr.bf16.mxu0 %v2039_v53 }
 0x964   :  { %v2054_v41 = vpop.eup %2053  ;;  %1943 = vmatpush3.bf16.msra.mxu0 %v2039_v53 }
 0x965   :  { %v2056_v42 = vpop.eup %2055  ;;  %v1359_v34 = vmul.f32 %v2054_v41, %v2505_v8  ;;  %1944 = vmatprep.subr.bf16.mxu0 %v2040_v54 }
 0x966   :  { %v2058_v43 = vpop.eup %2057  ;;  %v1361_v46 = vmul.f32 %v2056_v42, %v2505_v8 }
 0x967   :  { %v1360_v44 = vmul.f32 %v2058_v43, %v2505_v8  ;;  %v2060_v45 = vpop.eup %2059 }
 0x968   :  { %v1362_v49 = vmul.f32 %v2060_v45, %v2505_v8  ;;  %1945 = vmatpush3.bf16.msra.mxu0 %v2040_v54  ;;  %v2043_v8 = vld [vmem:[#allocation11 + $0x30] sm:$0xff]  }
 0x969   :  { %v1363_v48 = vadd.f32 %v1360_v44, %v1359_v34  ;;  %1946 = vmatprep.subr.bf16.mxu0 %v2041_v55 }
 0x96b   :  { %v1364_v50 = vadd.f32 %v1363_v48, %v1361_v46 }
 0x96c   :  { %1947 = vmatpush3.bf16.msra.mxu0 %v2041_v55 }
 0x96d   :  { %v1365_v51 = vadd.f32 %v1364_v50, %v1362_v49  ;;  %1948 = vmatprep.subr.bf16.mxu0 %v2042_v57 }
 0x96f   :  { %1366 = vadd.xlane.f32.xlu0 %v1365_v51 }
 0x970   :  { %1949 = vmatpush3.bf16.msra.mxu0 %v2042_v57 }
 0x971   :  { %1950 = vmatprep.subr.bf16.mxu0 %v2043_v8 }
 0x974   :  { %1951 = vmatpush3.bf16.msra.mxu0 %v2043_v8 }
 0x975   :  { %1952 = vmatprep.subr.bf16.mxu0 %v2044_v58 }
 0x978   :  { %1953 = vmatpush3.bf16.msra.mxu0 %v2044_v58 }
 0x9fc   :  { %v1367_v59 = vpop.xlane.xlu0 %1366 }
 0x9fd   :  { %v1368_v60 = vrot.slane %v1367_v59, 4 }
 0x9ff   :  { %v1369_v3 = vadd.f32 %v1368_v60, %v1367_v59 }
 0xa01   :  { %v1370_v4 = vrot.slane %v1369_v3, 2 }
 0xa03   :  { %v1371_v5 = vadd.f32 %v1370_v4, %v1369_v3 }
 0xa05   :  { %v1372_v6 = vrot.slane %v1371_v5, 1 }
 0xa07   :  { %v1373_v7 = vadd.f32 %v1372_v6, %v1371_v5 }
 0xa09   :  { %1960 = vpush %v1373_v7 }
 0xa3a   :  { %s1961_s27 = spop %1960 }
 0xa3b   :  { %v1375_v62 = vstv %s1961_s27 }
 0xa3c   :  { %v1376_v0 = vmul.f32 0.03125, %v1375_v62 }
 0xa3e   :  { %v1377_v47 = vmax.f32 %v785_v63, %v1376_v0 }
 0xa40   :  { %v1378_v1 = vsub.f32 %v785_v63, %v1377_v47  ;;  %v1381_v9 = vsub.f32 %v1376_v0, %v1377_v47 }
 0xa42   :  { %v1379_v2 = vmul.f32 1.442695, %v1378_v1  ;;  %v1382_v18 = vmul.f32 1.442695, %v1381_v9 }
 0xa44   :  { %2061 = vpow2.f32 %v1379_v2 }
 0xa45   :  { %2063 = vpow2.f32 %v1382_v18 }
 0xa4e   :  { %v2062_v10 = vpop.eup %2061 }
 0xa4f   :  { %v2064_v19 = vpop.eup %2063 }
 0xa50   :  { %v1384_v14 = vadd.f32 %v2064_v19, %v2062_v10 }
 0xa52   :  { %2065 = vrcp.f32 %v1384_v14 }
 0xa5c   :  { %v2066_v22 = vpop.eup %2065 }
 0xa5d   :  { %v1392_v24 = vmul.f32 %v2066_v22, %v2064_v19  ;;  %v1387_v27 = vmul.f32 %v2066_v22, %v2062_v10 }
 0xa5f   :  { %v1388_v33 = vmul.f32 %v1387_v27, %v649_v30  ;;  %v1389_v35 = vmul.f32 %v1387_v27, %v650_v31  ;;  %v1393_v36 = vmul.f32 %v1392_v24, %v1300_v17  ;;  %v1394_v37 = vmul.f32 %v1392_v24, %v1301_v20 }
 0xa60   :  { %v1390_v38 = vmul.f32 %v1387_v27, %v651_v32  ;;  %v1391_v39 = vmul.f32 %v1387_v27, %v652_v29  ;;  %v1395_v40 = vmul.f32 %v1392_v24, %v1302_v21  ;;  %v1396_v23 = vmul.f32 %v1392_v24, %v1303_v16 }
 0xa61   :  { %v1397_v28 = vadd.f32 %v1393_v36, %v1388_v33  ;;  %v1398_v30 = vadd.f32 %v1394_v37, %v1389_v35 }
 0xa62   :  { %v1399_v31 = vadd.f32 %v1395_v40, %v1390_v38  ;;  %v1400_v11 = vadd.f32 %v1396_v23, %v1391_v39 }
 0xa63   :  { %v1401_v17 = vpack.c.bf16 %v1398_v30, %v1397_v28 }
 0xa64   :  { %v1402_v41 = vpack.c.bf16 %v1400_v11, %v1399_v31 }
 0xa65   :  { %1954 = vmatprep.mubr.bf16.mxu0 %v1401_v17 }
 0xa66   :  { %1955 = vmatmul.mubr.bf16.vlgmr.msra.gmra.mrb[16].mxu0 %v1402_v41 }
 0xb39   :  { %v1956_v26 = vpop.f32.mrb[16].mxu0 }
 0xb3a   :  { %v1517_v29 = vadd.f32 %v1956_v26, %v1631_v25  ;;  %v1508_v32 = vpop.f32.mrb[17].mxu0 }
 0xb3b   :  { %v1509_v12 = vadd.f32 %v1631_v25, %v1508_v32  ;;  %v1957_v13 = vpop.f32.mrb[18].mxu0 }
 0xb3c   :  { %1525 = vst [vmem:[#allocation13 + $0x10] sm:$0xff] %v1517_v29  ;;  %v1520_v15 = vadd.f32 %v1957_v13, %v1631_v25  ;;  %v1511_v16 = vpop.f32.mrb[19].mxu0 }
 0xb3d   :  { %1523 = vst [vmem:[#allocation13] sm:$0xff] %v1509_v12  ;;  %v1512_v20 = vadd.f32 %v1631_v25, %v1511_v16 }
 0xb3e   :  { %1526 = vst [vmem:[#allocation13 + $0x18] sm:$0xff] %v1520_v15 }
 0xb3f   :  { %1524 = vst [vmem:[#allocation13 + $0x8] sm:$0xff] %v1512_v20 }
 0xb40   :  { %2210 = shalt.err (!%p2207_p10)
}
 0xb41   :  { %s2211_s0 = scalar_lea.hbm %s2607_s11, 512 }
 0xb42   :  { %p2212_p11 = scmp.ne.s32.totalorder %s2607_s11, %s2211_s0  ;;  %p2215_p12 = scmp.lt.u32.totalorder %s2211_s0, %s2607_s11 }
 0xb44   :  { %p2217_p13 = pnand %p2215_p12, %p2212_p11 }
 0xb46   :  { %2220 = shalt.err (!%p2217_p13)
}
 0xb47   :  { %s2240_s9 = smov 128   ;;  %s2241_s29 = smov 8  }
 0xb48   :  { %1538 = dma.vmem_to_hbm [thread:$0]  %s1533_s24, 512, %s2607_s11, [#allocation4], %s2240_s9, %s2240_s9, %s2241_s29  }
 0xb49   :  { %2229 = dma.done.wait [#allocation4], 512  }
 0xb4a   :  { %2230 = vsyncadd [#allocation4], 4294966784 }
 0xb4b   :  { %1542 = vsyncpa [#allocation3], 1 }
 0xb4c   :  { %1543 = vsyncpa [#allocation6], 1 }
 0xb4d   :  { %1544 = vsyncpa [#allocation9], 1 }
 0xb4e   :  { %1545 = vsyncpa [#allocation12], 1 }
 0xb4f   :  { %1546 = vsyncpa [#allocation4], 1 }

</bundles_post_ra>
